<compile_context>
chip_gen: v7x
topology: tpu7x:2x2x1
jax: 0.10.0
libtpu: 0.0.40
codegen_flags: <defaults>
</compile_context>

<pallas_src>
import functools

import jax
import jax.numpy as jnp
from jax import lax
from jax.experimental import pallas as pl
from jax.experimental.pallas import tpu as pltpu


_VMEM_LIMIT = 32 * 1024 * 1024  # explicit scoped-VMEM limit, safe on v5e/v6e/v7x


def _round_up(x, m):
    return ((x + m - 1) // m) * m


def _pick_tile(m, cands):
    """Largest candidate tile that divides m; otherwise m itself (single tile)
    or the smallest candidate with a ragged last tile."""
    for c in cands:
        if m >= c and m % c == 0:
            return c
    return m if m <= cands[0] else cands[-1]


# ----------------------------------------------------------------------------
# Pallas kernels
# ----------------------------------------------------------------------------

def _conv1_tex_kernel(p_ref, w1_ref, b1_ref, wt_ref, bt_ref, skip_ref, flow_ref):
    """Fused conv1 (3x3/s2) + ReLU + 1x1 texture head + tanh.

    Transposed orientation (out-channels on sublanes, spatial on lanes):
      p_ref   : (1, K1, TM) bf16  im2col patch columns for one batch
      w1_ref  : (C1, K1)    bf16
      b1_ref  : (C1, 1)     f32
      wt_ref  : (CF, C1)    bf16  1x1 texture-head weights
      bt_ref  : (CF, 1)     f32
      skip_ref: (1, C1, TM) bf16  lane-dense output, no channel padding
      flow_ref: (1, CF, TM) f32   flow coordinates kept in f32
    """
    y = jnp.dot(w1_ref[...], p_ref[0], preferred_element_type=jnp.float32)
    y = jnp.maximum(y + b1_ref[...], 0.0)                       # (C1, TM)
    skip_ref[0] = y.astype(skip_ref.dtype)
    f = jnp.dot(wt_ref[...], y.astype(jnp.bfloat16),
                preferred_element_type=jnp.float32)              # (CF, TM)
    flow_ref[0] = jnp.tanh(f + bt_ref[...]).astype(flow_ref.dtype)


def _conv2_max_kernel(p_ref, w_ref, b_ref, o_ref, mx_ref, *, m_total):
    """Fused conv2 (3x3/s2) + ReLU + running spatial max (pose embedding).

      p_ref : (1, K2, TM) bf16, w_ref: (C2, K2) bf16, b_ref: (C2, 1) f32
      o_ref : (1, C2, 1) f32,   mx_ref: (C2, 1) f32 VMEM running max
    The conv feature map never hits HBM.
    """
    mi = pl.program_id(1)
    tm = p_ref.shape[2]
    y = jnp.dot(w_ref[...], p_ref[0], preferred_element_type=jnp.float32)
    y = jnp.maximum(y + b_ref[...], 0.0)                         # (C2, TM)
    if m_total % tm != 0:
        # Trace-time check: the lane mask is only emitted for ragged tilings
        # (never at the production sizes, where TM divides M exactly).
        lane = mi * tm + lax.broadcasted_iota(jnp.int32, y.shape, 1)
        y = jnp.where(lane < m_total, y, -jnp.inf)
    tile_max = jnp.max(y, axis=1, keepdims=True)                 # (C2, 1)

    @pl.when(mi == 0)
    def _():
        mx_ref[...] = tile_max

    @pl.when(mi > 0)
    def _():
        mx_ref[...] = jnp.maximum(mx_ref[...], tile_max)

    @pl.when(mi == pl.num_programs(1) - 1)
    def _():
        o_ref[0] = mx_ref[...]


def _grid_sample_uv_kernel(flow_ref, img_ref, uv_ref, uvvec_ref, *, H, W, C):
    """Bilinear grid_sample (align_corners=False, zeros padding) fused with
    process_uv_image, as separable corner weights:

        uv[c, p] = sum_h sum_w img[c, h, w] * A[p, h] * B[p, w]
        A[p, y0] = wy0, A[p, y0+1] = wy1   (out-of-range corners never match
        B[p, x0] = wx0, B[p, x0+1] = wx1    the iota -> zeros padding for free)

    The y-gather is one MXU matmul (C*W, H) @ (H, PT); the x-gather is a
    per-channel weighted sublane reduction.  Live vector state is O(C*W*PT),
    independent of P, and the grid tiles P.

      flow_ref : (1, 2, PT)   f32  normalized coords (x row, y row)
      img_ref  : (1, C*W, H)  bf16 image, (c, w) on sublanes, h on lanes
      uv_ref   : (1, C, PT)        sampled uv_image
      uvvec_ref: (1, C, PT)        process_uv_image(uv_image)
    """
    gx = flow_ref[0, 0:1, :]                                     # (1, PT)
    gy = flow_ref[0, 1:2, :]
    ix = (gx + 1.0) * (W * 0.5) - 0.5
    iy = (gy + 1.0) * (H * 0.5) - 0.5
    ix0 = jnp.floor(ix)
    iy0 = jnp.floor(iy)
    wx1 = ix - ix0
    wx0 = 1.0 - wx1
    wy1 = iy - iy0
    wy0 = 1.0 - wy1
    ix0i = ix0.astype(jnp.int32)
    iy0i = iy0.astype(jnp.int32)
    pt = gx.shape[1]

    h_iota = lax.broadcasted_iota(jnp.int32, (H, pt), 0)
    a_t = (jnp.where(h_iota == iy0i, wy0, 0.0) +
           jnp.where(h_iota == iy0i + 1, wy1, 0.0))              # (H, PT) f32
    w_iota = lax.broadcasted_iota(jnp.int32, (W, pt), 0)
    b_t = (jnp.where(w_iota == ix0i, wx0, 0.0) +
           jnp.where(w_iota == ix0i + 1, wx1, 0.0))              # (W, PT) f32

    # Row gather on the MXU, bf16 operands / f32 accumulate.
    tmp = jnp.dot(img_ref[0], a_t.astype(jnp.bfloat16),
                  preferred_element_type=jnp.float32)            # (C*W, PT)

    def sample_channel(c):
        # Column gather: weighted reduction over W (sublane axis).
        return jnp.sum(tmp[c * W:(c + 1) * W, :] * b_t, axis=0, keepdims=True)

    # Fused process_uv_image epilogue (slice stores; C == 4: RGB + mask).
    msk = sample_channel(3)                                      # (1, PT)
    zeros = msk == 0.0
    uv_ref[0, 3:4, :] = msk.astype(uv_ref.dtype)
    uvvec_ref[0, 3:4, :] = jnp.where(zeros, -1.0, 1.0).astype(uvvec_ref.dtype)
    for c in range(3):
        vc = sample_channel(c)
        uv_ref[0, c:c + 1, :] = vc.astype(uv_ref.dtype)
        uvvec_ref[0, c:c + 1, :] = jnp.where(zeros, 0.0, vc / 5.0).astype(
            uvvec_ref.dtype)


def _head_linear_kernel(x_ref, w_ref, b_ref, o_ref):
    """SMPL-head linear: (B, K) @ (K, Npad) + b, f32 output."""
    o_ref[...] = (jnp.dot(x_ref[...], w_ref[...],
                          preferred_element_type=jnp.float32) + b_ref[...])


# ----------------------------------------------------------------------------
# Pallas wrappers
# ----------------------------------------------------------------------------

def _im2col_t(x, k, stride, pad, out_dtype=jnp.bfloat16):
    """x: (B, C, H, W) -> (B, k*k*C, Ho*Wo) patch columns, row order (kh,kw,c).

    # TODO(synk): fuse this im2col into the conv kernels (shifted-window input
    # blocks built in VMEM) to drop the k*k-inflated patch tensor in HBM.
    """
    B, C, H, W = x.shape
    x = x.astype(out_dtype)
    xp = jnp.pad(x, ((0, 0), (0, 0), (pad, pad), (pad, pad)))
    Hp, Wp = H + 2 * pad, W + 2 * pad
    Ho = (Hp - k) // stride + 1
    Wo = (Wp - k) // stride + 1
    cols = []
    for i in range(k):
        for j in range(k):
            cols.append(xp[:, :, i:i + stride * Ho:stride,
                           j:j + stride * Wo:stride])
    pat = jnp.stack(cols, axis=1)                        # (B, k*k, C, Ho, Wo)
    return pat.reshape(B, k * k * C, Ho * Wo), Ho, Wo


def pallas_conv1_texture(patches, w1, b1, wt, bt):
    """Fused conv1+ReLU and 1x1 texture-head+tanh over im2col patch columns.

    patches: (B, K1, M1) bf16.  Returns skips (B, C1, M1) bf16 and
    flow (B, CF, M1) f32, both lane-dense with no channel padding.
    """
    B, K1, M1 = patches.shape
    C1 = w1.shape[0]
    CF = wt.shape[0]
    tm = _pick_tile(M1, (2048, 1024, 512, 256, 128))
    gm = pl.cdiv(M1, tm)
    return pl.pallas_call(
        _conv1_tex_kernel,
        out_shape=(jax.ShapeDtypeStruct((B, C1, M1), jnp.bfloat16),
                   jax.ShapeDtypeStruct((B, CF, M1), jnp.float32)),
        grid=(B, gm),
        in_specs=[
            pl.BlockSpec((1, K1, tm), lambda bi, mi: (bi, 0, mi)),
            pl.BlockSpec((C1, K1), lambda bi, mi: (0, 0)),
            pl.BlockSpec((C1, 1), lambda bi, mi: (0, 0)),
            pl.BlockSpec((CF, C1), lambda bi, mi: (0, 0)),
            pl.BlockSpec((CF, 1), lambda bi, mi: (0, 0)),
        ],
        out_specs=(pl.BlockSpec((1, C1, tm), lambda bi, mi: (bi, 0, mi)),
                   pl.BlockSpec((1, CF, tm), lambda bi, mi: (bi, 0, mi))),
        compiler_params=pltpu.CompilerParams(
            dimension_semantics=("parallel", "parallel"),
            vmem_limit_bytes=_VMEM_LIMIT),
    )(patches,
      w1.astype(jnp.bfloat16),
      b1.reshape(C1, 1).astype(jnp.float32),
      wt.astype(jnp.bfloat16),
      bt.reshape(CF, 1).astype(jnp.float32))


def pallas_conv2_spatial_max(patches, w, b):
    """Fused conv2+ReLU+spatial-max: returns pose embeddings (B, C2) f32.

    # TODO(synk): for v7x at B == 1, split the M axis into a parallel outer
    # sub-axis (two-stage max) so both TensorCores get work.
    """
    B, K2, M2 = patches.shape
    C2 = w.shape[0]
    tm = _pick_tile(M2, (2048, 1024, 512, 256, 128))
    gm = pl.cdiv(M2, tm)
    out = pl.pallas_call(
        functools.partial(_conv2_max_kernel, m_total=M2),
        out_shape=jax.ShapeDtypeStruct((B, C2, 1), jnp.float32),
        grid=(B, gm),
        in_specs=[
            pl.BlockSpec((1, K2, tm), lambda bi, mi: (bi, 0, mi)),
            pl.BlockSpec((C2, K2), lambda bi, mi: (0, 0)),
            pl.BlockSpec((C2, 1), lambda bi, mi: (0, 0)),
        ],
        out_specs=pl.BlockSpec((1, C2, 1), lambda bi, mi: (bi, 0, 0)),
        scratch_shapes=[pltpu.VMEM((C2, 1), jnp.float32)],
        compiler_params=pltpu.CompilerParams(
            dimension_semantics=("parallel", "arbitrary"),
            vmem_limit_bytes=_VMEM_LIMIT),
    )(patches, w.astype(jnp.bfloat16), b.reshape(C2, 1).astype(jnp.float32))
    return out.reshape(B, C2)


def pallas_grid_sample_uv(flow_flat, img, H, W):
    """Fused bilinear grid_sample + process_uv_image.

    flow_flat: (B, 2, P) f32 normalized coords; img: (B, C, H, W).
    Returns (uv_image, uv_vector), both (B, C, P) f32.
    """
    B, C = img.shape[0], img.shape[1]
    P = flow_flat.shape[2]
    assert C == 4, "process_uv_image epilogue assumes RGB+mask input (C == 4)"
    # Whole (C*W, H) image per batch stays resident in VMEM (<= ~0.5 MiB bf16
    # at 256x256); only the output-point axis is tiled.  bf16 sampling operands
    # introduce ~1e-2 relative rounding in uv_image (acceptable per review).
    img_t = img.transpose(0, 1, 3, 2).reshape(B, C * W, H).astype(jnp.bfloat16)
    ptile = _pick_tile(P, (512, 256, 128))
    gp = pl.cdiv(P, ptile)
    uv, uvv = pl.pallas_call(
        functools.partial(_grid_sample_uv_kernel, H=H, W=W, C=C),
        out_shape=(jax.ShapeDtypeStruct((B, C, P), jnp.float32),
                   jax.ShapeDtypeStruct((B, C, P), jnp.float32)),
        grid=(B, gp),
        in_specs=[
            pl.BlockSpec((1, 2, ptile), lambda bi, pi: (bi, 0, pi)),
            pl.BlockSpec((1, C * W, H), lambda bi, pi: (bi, 0, 0)),
        ],
        out_specs=(pl.BlockSpec((1, C, ptile), lambda bi, pi: (bi, 0, pi)),
                   pl.BlockSpec((1, C, ptile), lambda bi, pi: (bi, 0, pi))),
        compiler_params=pltpu.CompilerParams(
            dimension_semantics=("parallel", "parallel"),
            vmem_limit_bytes=_VMEM_LIMIT),
    )(flow_flat, img_t)
    return uv, uvv


def pallas_head_linear(x, w, b):
    """(B, K) @ (K, N) + b with f32 output (SMPL head; tiny)."""
    B, K = x.shape
    N = w.shape[1]
    Npad = _round_up(N, 128)
    wb = jnp.pad(w, ((0, 0), (0, Npad - N))).astype(jnp.bfloat16)
    bb = jnp.pad(b, ((0, Npad - N),)).reshape(1, Npad).astype(jnp.float32)
    out = pl.pallas_call(
        _head_linear_kernel,
        out_shape=jax.ShapeDtypeStruct((B, Npad), jnp.float32),
        grid=(1,),
        in_specs=[
            pl.BlockSpec((B, K), lambda i: (0, 0)),
            pl.BlockSpec((K, Npad), lambda i: (0, 0)),
            pl.BlockSpec((1, Npad), lambda i: (0, 0)),
        ],
        out_specs=pl.BlockSpec((B, Npad), lambda i: (0, 0)),
        compiler_params=pltpu.CompilerParams(vmem_limit_bytes=_VMEM_LIMIT),
    )(x.astype(jnp.bfloat16), wb, bb)
    return out[:, :N]


# ----------------------------------------------------------------------------
# Model glue (parameter setup, rot6d conversion, forward)
# ----------------------------------------------------------------------------

def rot6d_to_rotmat(x):
    """x: (..., 6) -> (..., 3, 3) via Gram-Schmidt (standard SMPL-head conv.)."""
    a1, a2 = x[..., :3], x[..., 3:]
    b1 = a1 / (jnp.linalg.norm(a1, axis=-1, keepdims=True) + 1e-8)
    a2p = a2 - jnp.sum(b1 * a2, axis=-1, keepdims=True) * b1
    b2 = a2p / (jnp.linalg.norm(a2p, axis=-1, keepdims=True) + 1e-8)
    b3 = jnp.cross(b1, b2)
    return jnp.stack([b1, b2, b3], axis=-1)


def init_params(key):
    # TODO(synk): real HMAR uses a pretrained ResNet backbone, a multi-layer
    # TextureHead decoder and an SMPL transformer head loaded from checkpoints;
    # here they are replaced by shape-compatible synthetic reduced versions.
    c_in, c1, c2 = 4, 8, 16          # input channels (RGB+mask), skip, feat
    npose = 24 * 6 + 10 + 3          # 6d rotations + betas + cam
    ks = jax.random.split(key, 8)
    s = 0.1
    return {
        "conv1_w": s * jax.random.normal(ks[0], (c1, c_in, 3, 3), jnp.float32),
        "conv1_b": s * jax.random.normal(ks[1], (c1,), jnp.float32),
        "conv2_w": s * jax.random.normal(ks[2], (c2, c1, 3, 3), jnp.float32),
        "conv2_b": s * jax.random.normal(ks[3], (c2,), jnp.float32),
        "tex_w": s * jax.random.normal(ks[4], (2, c1, 1, 1), jnp.float32),
        "tex_b": s * jax.random.normal(ks[5], (2,), jnp.float32),
        "smpl_w": s * jax.random.normal(ks[6], (c2, npose), jnp.float32),
        "smpl_b": s * jax.random.normal(ks[7], (npose,), jnp.float32),
    }


def hmar_forward(params, x):
    """HMAR.forward. x: (B, 4, H, W) NCHW (RGB + mask)."""
    B, C_in, H, W = x.shape

    # Backbone stage 1 (3x3/s2 + ReLU) fused with the 1x1 texture head (+tanh):
    # one pass over the im2col patches; skips never re-read for the head.
    c1 = params["conv1_w"].shape[0]
    w1 = params["conv1_w"].transpose(0, 2, 3, 1).reshape(c1, -1)
    patches1, Ho1, Wo1 = _im2col_t(x, 3, 2, 1)
    skips, flow_flat = pallas_conv1_texture(
        patches1, w1, params["conv1_b"],
        params["tex_w"].reshape(params["tex_w"].shape[0], -1), params["tex_b"])

    # Backbone stage 2 (3x3/s2 + ReLU) fused with the spatial max -> pose emb.
    c2 = params["conv2_w"].shape[0]
    w2 = params["conv2_w"].transpose(0, 2, 3, 1).reshape(c2, -1)
    skips_img = skips.reshape(B, c1, Ho1, Wo1)
    patches2, _, _ = _im2col_t(skips_img, 3, 2, 1)
    pose_emb = pallas_conv2_spatial_max(patches2, w2, params["conv2_b"])

    # flow_to_texture (bilinear grid_sample of the input image at flow coords)
    # + process_uv_image fused in one kernel.  (Torch's in-place mutation of
    # uv_image's mask channel inside process_uv_image is not replicated.)
    uv_flat, uvv_flat = pallas_grid_sample_uv(flow_flat, x, H, W)
    uv_image = uv_flat.reshape(B, C_in, Ho1, Wo1)
    uv_vector = uvv_flat.reshape(B, C_in, Ho1, Wo1)
    flow = flow_flat.reshape(B, 2, Ho1, Wo1)

    # SMPL head under torch.no_grad()  -> stop_gradient here.
    head_in = lax.stop_gradient(pose_emb)
    head_out = pallas_head_linear(head_in, params["smpl_w"], params["smpl_b"])
    pose6d = head_out[:, :144].reshape(B, 24, 6)
    betas = head_out[:, 144:154]
    pred_cam = head_out[:, 154:157]
    rotmat = rot6d_to_rotmat(pose6d)                      # (B, 24, 3, 3)
    pred_smpl_params = {
        "global_orient": rotmat[:, :1],
        "body_pose": rotmat[:, 1:],
        "betas": betas,
    }

    return {
        "uv_image": uv_image,
        "uv_vector": uv_vector,
        "flow": flow,
        "pose_emb": pose_emb,
        "pose_smpl": pred_smpl_params,
        "pred_cam": pred_cam,
    }


if __name__ == "__main__":
    key = jax.random.PRNGKey(0)
    kx, kp = jax.random.split(key)
    B, C, H, W = 2, 4, 16, 16                     # small stand-in for (B,4,256,256)
    x = jax.random.normal(kx, (B, C, H, W), jnp.float32)
    params = init_params(kp)

    out = jax.jit(hmar_forward)(params, x)
    out = jax.block_until_ready(out)

    # light sanity checks on shapes
    assert out["uv_image"].shape == (B, 4, 8, 8)
    assert out["uv_vector"].shape == (B, 4, 8, 8)
    assert out["flow"].shape == (B, 2, 8, 8)
    assert out["pose_emb"].shape == (B, 16)
    assert out["pred_cam"].shape == (B, 3)
    assert out["pose_smpl"]["body_pose"].shape == (B, 23, 3, 3)
    print("KERNEL_OK")
</pallas_src>

<mosaic_0001>
module attributes {stable_mosaic.version = 11 : i64} {
  func.func @_conv1_tex_kernel(%arg0: i32, %arg1: i32, %arg2: memref<1x36x64xbf16, #tpu.memory_space<vmem>>, %arg3: memref<8x36xbf16, #tpu.memory_space<vmem>>, %arg4: memref<8x1xf32, #tpu.memory_space<vmem>>, %arg5: memref<2x8xbf16, #tpu.memory_space<vmem>>, %arg6: memref<2x1xf32, #tpu.memory_space<vmem>>, %arg7: memref<1x8x64xbf16, #tpu.memory_space<vmem>>, %arg8: memref<1x2x64xf32, #tpu.memory_space<vmem>>) attributes {dimension_semantics = [#tpu.dimension_semantics<parallel>, #tpu.dimension_semantics<parallel>], iteration_bounds = array<i64: 2, 1>, scalar_prefetch = 0 : i64, scratch_operands = 0 : i64, tpu.core_type = #tpu.core_type<tc>, window_params = [{transform_indices = @transform_0, window_bounds = array<i64: 1, 36, 64>}, {pipeline_mode = #tpu.pipeline_mode<synchronous>, transform_indices = @transform_1, window_bounds = array<i64: 8, 36>}, {pipeline_mode = #tpu.pipeline_mode<synchronous>, transform_indices = @transform_2, window_bounds = array<i64: 8, 1>}, {pipeline_mode = #tpu.pipeline_mode<synchronous>, transform_indices = @transform_3, window_bounds = array<i64: 2, 8>}, {pipeline_mode = #tpu.pipeline_mode<synchronous>, transform_indices = @transform_4, window_bounds = array<i64: 2, 1>}, {transform_indices = @transform_5, window_bounds = array<i64: 1, 8, 64>}, {transform_indices = @transform_6, window_bounds = array<i64: 1, 2, 64>}]} {
    %c0 = arith.constant 0 : index
    %c0_0 = arith.constant 0 : index
    %0 = vector.load %arg3[%c0, %c0_0] : memref<8x36xbf16, #tpu.memory_space<vmem>>, vector<8x36xbf16>
    %c0_1 = arith.constant 0 : index
    %c0_2 = arith.constant 0 : index
    %c0_3 = arith.constant 0 : index
    %1 = vector.load %arg2[%c0_1, %c0_2, %c0_3] : memref<1x36x64xbf16, #tpu.memory_space<vmem>>, vector<1x36x64xbf16>
    %2 = vector.shape_cast %1 : vector<1x36x64xbf16> to vector<36x64xbf16>
    %cst = arith.constant dense<0.000000e+00> : vector<8x64xf32>
    %3 = tpu.matmul %0, %2, %cst {dimension_numbers = #tpu.dot_dimension_numbers<[1], [0], [0], [1], [0, 0, 1, 1], [], []>} : vector<8x36xbf16>, vector<36x64xbf16>, vector<8x64xf32> -> vector<8x64xf32>
    %c0_4 = arith.constant 0 : index
    %c0_5 = arith.constant 0 : index
    %4 = vector.load %arg4[%c0_4, %c0_5] : memref<8x1xf32, #tpu.memory_space<vmem>>, vector<8x1xf32>
    %5 = vector.broadcast %4 : vector<8x1xf32> to vector<8x64xf32>
    %6 = arith.addf %3, %5 : vector<8x64xf32>
    %cst_6 = arith.constant 0.000000e+00 : f32
    %7 = vector.broadcast %cst_6 : f32 to vector<8x64xf32>
    %8 = arith.maximumf %6, %7 : vector<8x64xf32>
    %9 = arith.truncf %8 : vector<8x64xf32> to vector<8x64xbf16>
    %c0_7 = arith.constant 0 : index
    %c0_8 = arith.constant 0 : index
    %c0_9 = arith.constant 0 : index
    %10 = vector.load %arg7[%c0_7, %c0_8, %c0_9] : memref<1x8x64xbf16, #tpu.memory_space<vmem>>, vector<1x8x64xbf16>
    %11 = vector.shape_cast %10 : vector<1x8x64xbf16> to vector<8x64xbf16>
    %12 = vector.shape_cast %9 : vector<8x64xbf16> to vector<1x8x64xbf16>
    tpu.vector_store %arg7[%c0_7, %c0_8, %c0_9], %12 {strides = array<i32>} : memref<1x8x64xbf16, #tpu.memory_space<vmem>>, vector<1x8x64xbf16>,
    %c0_10 = arith.constant 0 : index
    %c0_11 = arith.constant 0 : index
    %13 = vector.load %arg5[%c0_10, %c0_11] : memref<2x8xbf16, #tpu.memory_space<vmem>>, vector<2x8xbf16>
    %14 = arith.truncf %8 : vector<8x64xf32> to vector<8x64xbf16>
    %cst_12 = arith.constant dense<0.000000e+00> : vector<2x64xf32>
    %15 = tpu.matmul %13, %14, %cst_12 {dimension_numbers = #tpu.dot_dimension_numbers<[1], [0], [0], [1], [0, 0, 1, 1], [], []>} : vector<2x8xbf16>, vector<8x64xbf16>, vector<2x64xf32> -> vector<2x64xf32>
    %c0_13 = arith.constant 0 : index
    %c0_14 = arith.constant 0 : index
    %16 = vector.load %arg6[%c0_13, %c0_14] : memref<2x1xf32, #tpu.memory_space<vmem>>, vector<2x1xf32>
    %17 = vector.broadcast %16 : vector<2x1xf32> to vector<2x64xf32>
    %18 = arith.addf %15, %17 : vector<2x64xf32>
    %19 = math.tanh %18 : vector<2x64xf32>
    %c0_15 = arith.constant 0 : index
    %c0_16 = arith.constant 0 : index
    %c0_17 = arith.constant 0 : index
    %20 = vector.load %arg8[%c0_15, %c0_16, %c0_17] : memref<1x2x64xf32, #tpu.memory_space<vmem>>, vector<1x2x64xf32>
    %21 = vector.shape_cast %20 : vector<1x2x64xf32> to vector<2x64xf32>
    %22 = vector.shape_cast %19 : vector<2x64xf32> to vector<1x2x64xf32>
    tpu.vector_store %arg8[%c0_15, %c0_16, %c0_17], %22 {strides = array<i32>} : memref<1x2x64xf32, #tpu.memory_space<vmem>>, vector<1x2x64xf32>,
    return
  }
  func.func @transform_0(%arg0: i32, %arg1: i32) -> (i32, i32, i32) {
    %c0_i32 = arith.constant 0 : i32
    %c0_i32_0 = arith.constant 0 : i32
    return %arg0, %c0_i32, %arg1 : i32, i32, i32
  }
  func.func @transform_1(%arg0: i32, %arg1: i32) -> (i32, i32) {
    %c0_i32 = arith.constant 0 : i32
    %c0_i32_0 = arith.constant 0 : i32
    %c0_i32_1 = arith.constant 0 : i32
    return %c0_i32, %c0_i32_0 : i32, i32
  }
  func.func @transform_2(%arg0: i32, %arg1: i32) -> (i32, i32) {
    %c0_i32 = arith.constant 0 : i32
    %c0_i32_0 = arith.constant 0 : i32
    %c0_i32_1 = arith.constant 0 : i32
    return %c0_i32, %c0_i32_0 : i32, i32
  }
  func.func @transform_3(%arg0: i32, %arg1: i32) -> (i32, i32) {
    %c0_i32 = arith.constant 0 : i32
    %c0_i32_0 = arith.constant 0 : i32
    %c0_i32_1 = arith.constant 0 : i32
    return %c0_i32, %c0_i32_0 : i32, i32
  }
  func.func @transform_4(%arg0: i32, %arg1: i32) -> (i32, i32) {
    %c0_i32 = arith.constant 0 : i32
    %c0_i32_0 = arith.constant 0 : i32
    %c0_i32_1 = arith.constant 0 : i32
    return %c0_i32, %c0_i32_0 : i32, i32
  }
  func.func @transform_5(%arg0: i32, %arg1: i32) -> (i32, i32, i32) {
    %c0_i32 = arith.constant 0 : i32
    %c0_i32_0 = arith.constant 0 : i32
    return %arg0, %c0_i32, %arg1 : i32, i32, i32
  }
  func.func @transform_6(%arg0: i32, %arg1: i32) -> (i32, i32, i32) {
    %c0_i32 = arith.constant 0 : i32
    %c0_i32_0 = arith.constant 0 : i32
    return %arg0, %c0_i32, %arg1 : i32, i32, i32
  }
}

module attributes {stable_mosaic.version = 11 : i64} {
  func.func @_conv2_max_kernel(%arg0: i32, %arg1: i32, %arg2: memref<1x72x16xbf16, #tpu.memory_space<vmem>>, %arg3: memref<16x72xbf16, #tpu.memory_space<vmem>>, %arg4: memref<16x1xf32, #tpu.memory_space<vmem>>, %arg5: memref<1x16x1xf32, #tpu.memory_space<vmem>>, %arg6: memref<16x1xf32, #tpu.memory_space<vmem>>) attributes {dimension_semantics = [#tpu.dimension_semantics<parallel>, #tpu.dimension_semantics<arbitrary>], iteration_bounds = array<i64: 2, 1>, scalar_prefetch = 0 : i64, scratch_operands = 1 : i64, tpu.core_type = #tpu.core_type<tc>, window_params = [{transform_indices = @transform_0, window_bounds = array<i64: 1, 72, 16>}, {pipeline_mode = #tpu.pipeline_mode<synchronous>, transform_indices = @transform_1, window_bounds = array<i64: 16, 72>}, {pipeline_mode = #tpu.pipeline_mode<synchronous>, transform_indices = @transform_2, window_bounds = array<i64: 16, 1>}, {transform_indices = @transform_3, window_bounds = array<i64: 1, 16, 1>}]} {
    %c0 = arith.constant 0 : index
    %c0_0 = arith.constant 0 : index
    %0 = vector.load %arg3[%c0, %c0_0] : memref<16x72xbf16, #tpu.memory_space<vmem>>, vector<16x72xbf16>
    %c0_1 = arith.constant 0 : index
    %c0_2 = arith.constant 0 : index
    %c0_3 = arith.constant 0 : index
    %1 = vector.load %arg2[%c0_1, %c0_2, %c0_3] : memref<1x72x16xbf16, #tpu.memory_space<vmem>>, vector<1x72x16xbf16>
    %2 = vector.shape_cast %1 : vector<1x72x16xbf16> to vector<72x16xbf16>
    %cst = arith.constant dense<0.000000e+00> : vector<16x16xf32>
    %3 = tpu.matmul %0, %2, %cst {dimension_numbers = #tpu.dot_dimension_numbers<[1], [0], [0], [1], [0, 0, 1, 1], [], []>} : vector<16x72xbf16>, vector<72x16xbf16>, vector<16x16xf32> -> vector<16x16xf32>
    %c0_4 = arith.constant 0 : index
    %c0_5 = arith.constant 0 : index
    %4 = vector.load %arg4[%c0_4, %c0_5] : memref<16x1xf32, #tpu.memory_space<vmem>>, vector<16x1xf32>
    %5 = vector.broadcast %4 : vector<16x1xf32> to vector<16x16xf32>
    %6 = arith.addf %3, %5 : vector<16x16xf32>
    %cst_6 = arith.constant 0.000000e+00 : f32
    %7 = vector.broadcast %cst_6 : f32 to vector<16x16xf32>
    %8 = arith.maximumf %6, %7 : vector<16x16xf32>
    %cst_7 = arith.constant dense<0xFF800000> : vector<16xf32>
    %9 = vector.multi_reduction <maximumf>, %8, %cst_7 [1] : vector<16x16xf32> to vector<16xf32>
    %10 = vector.shape_cast %9 : vector<16xf32> to vector<16x1xf32>
    %c0_i32 = arith.constant 0 : i32
    %11 = arith.cmpi eq, %arg1, %c0_i32 : i32
    %12 = arith.extui %11 : i1 to i32
    %c0_i32_8 = arith.constant 0 : i32
    %13 = arith.cmpi ne, %12, %c0_i32_8 : i32
    scf.if %13 {
      %c0_13 = arith.constant 0 : index
      %c0_14 = arith.constant 0 : index
      %20 = vector.load %arg6[%c0_13, %c0_14] : memref<16x1xf32, #tpu.memory_space<vmem>>, vector<16x1xf32>
      tpu.vector_store %arg6[%c0_13, %c0_14], %10 {strides = array<i32>} : memref<16x1xf32, #tpu.memory_space<vmem>>, vector<16x1xf32>,
    } else {
    }
    %c0_i32_9 = arith.constant 0 : i32
    %14 = arith.cmpi sgt, %arg1, %c0_i32_9 : i32
    %15 = arith.extui %14 : i1 to i32
    %c0_i32_10 = arith.constant 0 : i32
    %16 = arith.cmpi ne, %15, %c0_i32_10 : i32
    scf.if %16 {
      %c0_13 = arith.constant 0 : index
      %c0_14 = arith.constant 0 : index
      %20 = vector.load %arg6[%c0_13, %c0_14] : memref<16x1xf32, #tpu.memory_space<vmem>>, vector<16x1xf32>
      %21 = arith.maximumf %20, %10 : vector<16x1xf32>
      %c0_15 = arith.constant 0 : index
      %c0_16 = arith.constant 0 : index
      %22 = vector.load %arg6[%c0_15, %c0_16] : memref<16x1xf32, #tpu.memory_space<vmem>>, vector<16x1xf32>
      tpu.vector_store %arg6[%c0_15, %c0_16], %21 {strides = array<i32>} : memref<16x1xf32, #tpu.memory_space<vmem>>, vector<16x1xf32>,
    } else {
    }
    %c0_i32_11 = arith.constant 0 : i32
    %17 = arith.cmpi eq, %arg1, %c0_i32_11 : i32
    %18 = arith.extui %17 : i1 to i32
    %c0_i32_12 = arith.constant 0 : i32
    %19 = arith.cmpi ne, %18, %c0_i32_12 : i32
    scf.if %19 {
      %c0_13 = arith.constant 0 : index
      %c0_14 = arith.constant 0 : index
      %20 = vector.load %arg6[%c0_13, %c0_14] : memref<16x1xf32, #tpu.memory_space<vmem>>, vector<16x1xf32>
      %c0_15 = arith.constant 0 : index
      %c0_16 = arith.constant 0 : index
      %c0_17 = arith.constant 0 : index
      %21 = vector.load %arg5[%c0_15, %c0_16, %c0_17] : memref<1x16x1xf32, #tpu.memory_space<vmem>>, vector<1x16x1xf32>
      %22 = vector.shape_cast %21 : vector<1x16x1xf32> to vector<16x1xf32>
      %23 = vector.shape_cast %20 : vector<16x1xf32> to vector<1x16x1xf32>
      tpu.vector_store %arg5[%c0_15, %c0_16, %c0_17], %23 {strides = array<i32>} : memref<1x16x1xf32, #tpu.memory_space<vmem>>, vector<1x16x1xf32>,
    } else {
    }
    return
  }
  func.func @transform_0(%arg0: i32, %arg1: i32) -> (i32, i32, i32) {
    %c0_i32 = arith.constant 0 : i32
    %c0_i32_0 = arith.constant 0 : i32
    return %arg0, %c0_i32, %arg1 : i32, i32, i32
  }
  func.func @transform_1(%arg0: i32, %arg1: i32) -> (i32, i32) {
    %c0_i32 = arith.constant 0 : i32
    %c0_i32_0 = arith.constant 0 : i32
    %c0_i32_1 = arith.constant 0 : i32
    return %c0_i32, %c0_i32_0 : i32, i32
  }
  func.func @transform_2(%arg0: i32, %arg1: i32) -> (i32, i32) {
    %c0_i32 = arith.constant 0 : i32
    %c0_i32_0 = arith.constant 0 : i32
    %c0_i32_1 = arith.constant 0 : i32
    return %c0_i32, %c0_i32_0 : i32, i32
  }
  func.func @transform_3(%arg0: i32, %arg1: i32) -> (i32, i32, i32) {
    %c0_i32 = arith.constant 0 : i32
    %c0_i32_0 = arith.constant 0 : i32
    %c0_i32_1 = arith.constant 0 : i32
    return %arg0, %c0_i32, %c0_i32_0 : i32, i32, i32
  }
}

module attributes {stable_mosaic.version = 11 : i64} {
  func.func @_head_linear_kernel(%arg0: i32, %arg1: memref<2x16xbf16, #tpu.memory_space<vmem>>, %arg2: memref<16x256xbf16, #tpu.memory_space<vmem>>, %arg3: memref<1x256xf32, #tpu.memory_space<vmem>>, %arg4: memref<2x256xf32, #tpu.memory_space<vmem>>) attributes {dimension_semantics = [#tpu.dimension_semantics<arbitrary>], iteration_bounds = array<i64: 1>, scalar_prefetch = 0 : i64, scratch_operands = 0 : i64, tpu.core_type = #tpu.core_type<tc>, window_params = [{pipeline_mode = #tpu.pipeline_mode<synchronous>, transform_indices = @transform_0, window_bounds = array<i64: 2, 16>}, {pipeline_mode = #tpu.pipeline_mode<synchronous>, transform_indices = @transform_1, window_bounds = array<i64: 16, 256>}, {pipeline_mode = #tpu.pipeline_mode<synchronous>, transform_indices = @transform_2, window_bounds = array<i64: 1, 256>}, {pipeline_mode = #tpu.pipeline_mode<synchronous>, transform_indices = @transform_3, window_bounds = array<i64: 2, 256>}]} {
    %c0 = arith.constant 0 : index
    %c0_0 = arith.constant 0 : index
    %0 = vector.load %arg1[%c0, %c0_0] : memref<2x16xbf16, #tpu.memory_space<vmem>>, vector<2x16xbf16>
    %c0_1 = arith.constant 0 : index
    %c0_2 = arith.constant 0 : index
    %1 = vector.load %arg2[%c0_1, %c0_2] : memref<16x256xbf16, #tpu.memory_space<vmem>>, vector<16x256xbf16>
    %cst = arith.constant dense<0.000000e+00> : vector<2x256xf32>
    %2 = tpu.matmul %0, %1, %cst {dimension_numbers = #tpu.dot_dimension_numbers<[1], [0], [0], [1], [0, 0, 1, 1], [], []>} : vector<2x16xbf16>, vector<16x256xbf16>, vector<2x256xf32> -> vector<2x256xf32>
    %c0_3 = arith.constant 0 : index
    %c0_4 = arith.constant 0 : index
    %3 = vector.load %arg3[%c0_3, %c0_4] : memref<1x256xf32, #tpu.memory_space<vmem>>, vector<1x256xf32>
    %4 = vector.broadcast %3 : vector<1x256xf32> to vector<2x256xf32>
    %5 = arith.addf %2, %4 : vector<2x256xf32>
    %c0_5 = arith.constant 0 : index
    %c0_6 = arith.constant 0 : index
    %6 = vector.load %arg4[%c0_5, %c0_6] : memref<2x256xf32, #tpu.memory_space<vmem>>, vector<2x256xf32>
    tpu.vector_store %arg4[%c0_5, %c0_6], %5 {strides = array<i32>} : memref<2x256xf32, #tpu.memory_space<vmem>>, vector<2x256xf32>,
    return
  }
  func.func @transform_0(%arg0: i32) -> (i32, i32) {
    %c0_i32 = arith.constant 0 : i32
    %c0_i32_0 = arith.constant 0 : i32
    %c0_i32_1 = arith.constant 0 : i32
    return %c0_i32, %c0_i32_0 : i32, i32
  }
  func.func @transform_1(%arg0: i32) -> (i32, i32) {
    %c0_i32 = arith.constant 0 : i32
    %c0_i32_0 = arith.constant 0 : i32
    %c0_i32_1 = arith.constant 0 : i32
    return %c0_i32, %c0_i32_0 : i32, i32
  }
  func.func @transform_2(%arg0: i32) -> (i32, i32) {
    %c0_i32 = arith.constant 0 : i32
    %c0_i32_0 = arith.constant 0 : i32
    %c0_i32_1 = arith.constant 0 : i32
    return %c0_i32, %c0_i32_0 : i32, i32
  }
  func.func @transform_3(%arg0: i32) -> (i32, i32) {
    %c0_i32 = arith.constant 0 : i32
    %c0_i32_0 = arith.constant 0 : i32
    %c0_i32_1 = arith.constant 0 : i32
    return %c0_i32, %c0_i32_0 : i32, i32
  }
}

module attributes {stable_mosaic.version = 11 : i64} {
  func.func @_grid_sample_uv_kernel(%arg0: i32, %arg1: i32, %arg2: memref<1x2x64xf32, #tpu.memory_space<vmem>>, %arg3: memref<1x64x16xbf16, #tpu.memory_space<vmem>>, %arg4: memref<1x4x64xf32, #tpu.memory_space<vmem>>, %arg5: memref<1x4x64xf32, #tpu.memory_space<vmem>>) attributes {dimension_semantics = [#tpu.dimension_semantics<parallel>, #tpu.dimension_semantics<parallel>], iteration_bounds = array<i64: 2, 1>, scalar_prefetch = 0 : i64, scratch_operands = 0 : i64, tpu.core_type = #tpu.core_type<tc>, window_params = [{transform_indices = @transform_0, window_bounds = array<i64: 1, 2, 64>}, {transform_indices = @transform_1, window_bounds = array<i64: 1, 64, 16>}, {transform_indices = @transform_2, window_bounds = array<i64: 1, 4, 64>}, {transform_indices = @transform_3, window_bounds = array<i64: 1, 4, 64>}]} {
    %c0 = arith.constant 0 : index
    %c0_0 = arith.constant 0 : index
    %c0_1 = arith.constant 0 : index
    %0 = vector.load %arg2[%c0, %c0_0, %c0_1] : memref<1x2x64xf32, #tpu.memory_space<vmem>>, vector<1x1x64xf32>
    %1 = vector.shape_cast %0 : vector<1x1x64xf32> to vector<1x64xf32>
    %c0_2 = arith.constant 0 : index
    %c1 = arith.constant 1 : index
    %c0_3 = arith.constant 0 : index
    %2 = vector.load %arg2[%c0_2, %c1, %c0_3] : memref<1x2x64xf32, #tpu.memory_space<vmem>>, vector<1x1x64xf32>
    %3 = vector.shape_cast %2 : vector<1x1x64xf32> to vector<1x64xf32>
    %cst = arith.constant 1.000000e+00 : f32
    %4 = vector.broadcast %cst : f32 to vector<1x64xf32>
    %5 = arith.addf %1, %4 : vector<1x64xf32>
    %cst_4 = arith.constant 8.000000e+00 : f32
    %6 = vector.broadcast %cst_4 : f32 to vector<1x64xf32>
    %7 = arith.mulf %5, %6 : vector<1x64xf32>
    %cst_5 = arith.constant 5.000000e-01 : f32
    %8 = vector.broadcast %cst_5 : f32 to vector<1x64xf32>
    %9 = arith.subf %7, %8 : vector<1x64xf32>
    %cst_6 = arith.constant 1.000000e+00 : f32
    %10 = vector.broadcast %cst_6 : f32 to vector<1x64xf32>
    %11 = arith.addf %3, %10 : vector<1x64xf32>
    %cst_7 = arith.constant 8.000000e+00 : f32
    %12 = vector.broadcast %cst_7 : f32 to vector<1x64xf32>
    %13 = arith.mulf %11, %12 : vector<1x64xf32>
    %cst_8 = arith.constant 5.000000e-01 : f32
    %14 = vector.broadcast %cst_8 : f32 to vector<1x64xf32>
    %15 = arith.subf %13, %14 : vector<1x64xf32>
    %16 = math.floor %9 : vector<1x64xf32>
    %17 = math.floor %15 : vector<1x64xf32>
    %18 = arith.subf %9, %16 : vector<1x64xf32>
    %cst_9 = arith.constant 1.000000e+00 : f32
    %19 = vector.broadcast %cst_9 : f32 to vector<1x64xf32>
    %20 = arith.subf %19, %18 : vector<1x64xf32>
    %21 = arith.subf %15, %17 : vector<1x64xf32>
    %cst_10 = arith.constant 1.000000e+00 : f32
    %22 = vector.broadcast %cst_10 : f32 to vector<1x64xf32>
    %23 = arith.subf %22, %21 : vector<1x64xf32>
    %24 = arith.fptosi %16 : vector<1x64xf32> to vector<1x64xi32>
    %25 = arith.fptosi %17 : vector<1x64xf32> to vector<1x64xi32>
    %26 = tpu.iota {dimensions = array<i32: 0>} : vector<16x64xi32>
    %27 = vector.broadcast %25 : vector<1x64xi32> to vector<16x64xi32>
    %28 = arith.cmpi eq, %26, %27 : vector<16x64xi32>
    %cst_11 = arith.constant 0.000000e+00 : f32
    %29 = vector.shape_cast %23 : vector<1x64xf32> to vector<1x64xf32>
    %30 = vector.broadcast %29 : vector<1x64xf32> to vector<16x64xf32>
    %31 = vector.broadcast %cst_11 : f32 to vector<16x64xf32>
    %32 = arith.select %28, %30, %31 : vector<16x64xi1>, vector<16x64xf32>
    %c1_i32 = arith.constant 1 : i32
    %33 = vector.broadcast %c1_i32 : i32 to vector<1x64xi32>
    %34 = arith.addi %25, %33 : vector<1x64xi32>
    %35 = vector.broadcast %34 : vector<1x64xi32> to vector<16x64xi32>
    %36 = arith.cmpi eq, %26, %35 : vector<16x64xi32>
    %cst_12 = arith.constant 0.000000e+00 : f32
    %37 = vector.shape_cast %21 : vector<1x64xf32> to vector<1x64xf32>
    %38 = vector.broadcast %37 : vector<1x64xf32> to vector<16x64xf32>
    %39 = vector.broadcast %cst_12 : f32 to vector<16x64xf32>
    %40 = arith.select %36, %38, %39 : vector<16x64xi1>, vector<16x64xf32>
    %41 = arith.addf %32, %40 : vector<16x64xf32>
    %42 = tpu.iota {dimensions = array<i32: 0>} : vector<16x64xi32>
    %43 = vector.broadcast %24 : vector<1x64xi32> to vector<16x64xi32>
    %44 = arith.cmpi eq, %42, %43 : vector<16x64xi32>
    %cst_13 = arith.constant 0.000000e+00 : f32
    %45 = vector.shape_cast %20 : vector<1x64xf32> to vector<1x64xf32>
    %46 = vector.broadcast %45 : vector<1x64xf32> to vector<16x64xf32>
    %47 = vector.broadcast %cst_13 : f32 to vector<16x64xf32>
    %48 = arith.select %44, %46, %47 : vector<16x64xi1>, vector<16x64xf32>
    %c1_i32_14 = arith.constant 1 : i32
    %49 = vector.broadcast %c1_i32_14 : i32 to vector<1x64xi32>
    %50 = arith.addi %24, %49 : vector<1x64xi32>
    %51 = vector.broadcast %50 : vector<1x64xi32> to vector<16x64xi32>
    %52 = arith.cmpi eq, %42, %51 : vector<16x64xi32>
    %cst_15 = arith.constant 0.000000e+00 : f32
    %53 = vector.shape_cast %18 : vector<1x64xf32> to vector<1x64xf32>
    %54 = vector.broadcast %53 : vector<1x64xf32> to vector<16x64xf32>
    %55 = vector.broadcast %cst_15 : f32 to vector<16x64xf32>
    %56 = arith.select %52, %54, %55 : vector<16x64xi1>, vector<16x64xf32>
    %57 = arith.addf %48, %56 : vector<16x64xf32>
    %c0_16 = arith.constant 0 : index
    %c0_17 = arith.constant 0 : index
    %c0_18 = arith.constant 0 : index
    %58 = vector.load %arg3[%c0_16, %c0_17, %c0_18] : memref<1x64x16xbf16, #tpu.memory_space<vmem>>, vector<1x64x16xbf16>
    %59 = vector.shape_cast %58 : vector<1x64x16xbf16> to vector<64x16xbf16>
    %60 = arith.truncf %41 : vector<16x64xf32> to vector<16x64xbf16>
    %cst_19 = arith.constant dense<0.000000e+00> : vector<64x64xf32>
    %61 = tpu.matmul %59, %60, %cst_19 {dimension_numbers = #tpu.dot_dimension_numbers<[1], [0], [0], [1], [0, 0, 1, 1], [], []>} : vector<64x16xbf16>, vector<16x64xbf16>, vector<64x64xf32> -> vector<64x64xf32>
    %62 = vector.extract_strided_slice %61 {offsets = [48, 0], sizes = [16, 64], strides = [1, 1]} : vector<64x64xf32> to vector<16x64xf32>
    %63 = arith.mulf %62, %57 : vector<16x64xf32>
    %cst_20 = arith.constant dense<0.000000e+00> : vector<64xf32>
    %64 = vector.multi_reduction <add>, %63, %cst_20 [0] : vector<16x64xf32> to vector<64xf32>
    %65 = vector.shape_cast %64 : vector<64xf32> to vector<1x64xf32>
    %cst_21 = arith.constant 0.000000e+00 : f32
    %66 = vector.broadcast %cst_21 : f32 to vector<1x64xf32>
    %67 = arith.cmpf oeq, %65, %66 : vector<1x64xf32>
    %c0_22 = arith.constant 0 : index
    %c3 = arith.constant 3 : index
    %c0_23 = arith.constant 0 : index
    %68 = vector.load %arg4[%c0_22, %c3, %c0_23] : memref<1x4x64xf32, #tpu.memory_space<vmem>>, vector<1x1x64xf32>
    %69 = vector.shape_cast %68 : vector<1x1x64xf32> to vector<1x64xf32>
    %70 = vector.shape_cast %65 : vector<1x64xf32> to vector<1x1x64xf32>
    tpu.vector_store %arg4[%c0_22, %c3, %c0_23], %70 {strides = array<i32>} : memref<1x4x64xf32, #tpu.memory_space<vmem>>, vector<1x1x64xf32>,
    %cst_24 = arith.constant -1.000000e+00 : f32
    %cst_25 = arith.constant 1.000000e+00 : f32
    %71 = vector.broadcast %cst_24 : f32 to vector<1x64xf32>
    %72 = vector.broadcast %cst_25 : f32 to vector<1x64xf32>
    %73 = arith.select %67, %71, %72 : vector<1x64xi1>, vector<1x64xf32>
    %c0_26 = arith.constant 0 : index
    %c3_27 = arith.constant 3 : index
    %c0_28 = arith.constant 0 : index
    %74 = vector.load %arg5[%c0_26, %c3_27, %c0_28] : memref<1x4x64xf32, #tpu.memory_space<vmem>>, vector<1x1x64xf32>
    %75 = vector.shape_cast %74 : vector<1x1x64xf32> to vector<1x64xf32>
    %76 = vector.shape_cast %73 : vector<1x64xf32> to vector<1x1x64xf32>
    tpu.vector_store %arg5[%c0_26, %c3_27, %c0_28], %76 {strides = array<i32>} : memref<1x4x64xf32, #tpu.memory_space<vmem>>, vector<1x1x64xf32>,
    %77 = vector.extract_strided_slice %61 {offsets = [0, 0], sizes = [16, 64], strides = [1, 1]} : vector<64x64xf32> to vector<16x64xf32>
    %78 = arith.mulf %77, %57 : vector<16x64xf32>
    %cst_29 = arith.constant dense<0.000000e+00> : vector<64xf32>
    %79 = vector.multi_reduction <add>, %78, %cst_29 [0] : vector<16x64xf32> to vector<64xf32>
    %80 = vector.shape_cast %79 : vector<64xf32> to vector<1x64xf32>
    %c0_30 = arith.constant 0 : index
    %c0_31 = arith.constant 0 : index
    %c0_32 = arith.constant 0 : index
    %81 = vector.load %arg4[%c0_30, %c0_31, %c0_32] : memref<1x4x64xf32, #tpu.memory_space<vmem>>, vector<1x1x64xf32>
    %82 = vector.shape_cast %81 : vector<1x1x64xf32> to vector<1x64xf32>
    %83 = vector.shape_cast %80 : vector<1x64xf32> to vector<1x1x64xf32>
    tpu.vector_store %arg4[%c0_30, %c0_31, %c0_32], %83 {strides = array<i32>} : memref<1x4x64xf32, #tpu.memory_space<vmem>>, vector<1x1x64xf32>,
    %cst_33 = arith.constant 5.000000e+00 : f32
    %84 = vector.broadcast %cst_33 : f32 to vector<1x64xf32>
    %85 = arith.divf %80, %84 : vector<1x64xf32>
    %cst_34 = arith.constant 0.000000e+00 : f32
    %86 = vector.broadcast %cst_34 : f32 to vector<1x64xf32>
    %87 = arith.select %67, %86, %85 : vector<1x64xi1>, vector<1x64xf32>
    %c0_35 = arith.constant 0 : index
    %c0_36 = arith.constant 0 : index
    %c0_37 = arith.constant 0 : index
    %88 = vector.load %arg5[%c0_35, %c0_36, %c0_37] : memref<1x4x64xf32, #tpu.memory_space<vmem>>, vector<1x1x64xf32>
    %89 = vector.shape_cast %88 : vector<1x1x64xf32> to vector<1x64xf32>
    %90 = vector.shape_cast %87 : vector<1x64xf32> to vector<1x1x64xf32>
    tpu.vector_store %arg5[%c0_35, %c0_36, %c0_37], %90 {strides = array<i32>} : memref<1x4x64xf32, #tpu.memory_space<vmem>>, vector<1x1x64xf32>,
    %91 = vector.extract_strided_slice %61 {offsets = [16, 0], sizes = [16, 64], strides = [1, 1]} : vector<64x64xf32> to vector<16x64xf32>
    %92 = arith.mulf %91, %57 : vector<16x64xf32>
    %cst_38 = arith.constant dense<0.000000e+00> : vector<64xf32>
    %93 = vector.multi_reduction <add>, %92, %cst_38 [0] : vector<16x64xf32> to vector<64xf32>
    %94 = vector.shape_cast %93 : vector<64xf32> to vector<1x64xf32>
    %c0_39 = arith.constant 0 : index
    %c1_40 = arith.constant 1 : index
    %c0_41 = arith.constant 0 : index
    %95 = vector.load %arg4[%c0_39, %c1_40, %c0_41] : memref<1x4x64xf32, #tpu.memory_space<vmem>>, vector<1x1x64xf32>
    %96 = vector.shape_cast %95 : vector<1x1x64xf32> to vector<1x64xf32>
    %97 = vector.shape_cast %94 : vector<1x64xf32> to vector<1x1x64xf32>
    tpu.vector_store %arg4[%c0_39, %c1_40, %c0_41], %97 {strides = array<i32>} : memref<1x4x64xf32, #tpu.memory_space<vmem>>, vector<1x1x64xf32>,
    %cst_42 = arith.constant 5.000000e+00 : f32
    %98 = vector.broadcast %cst_42 : f32 to vector<1x64xf32>
    %99 = arith.divf %94, %98 : vector<1x64xf32>
    %cst_43 = arith.constant 0.000000e+00 : f32
    %100 = vector.broadcast %cst_43 : f32 to vector<1x64xf32>
    %101 = arith.select %67, %100, %99 : vector<1x64xi1>, vector<1x64xf32>
    %c0_44 = arith.constant 0 : index
    %c1_45 = arith.constant 1 : index
    %c0_46 = arith.constant 0 : index
    %102 = vector.load %arg5[%c0_44, %c1_45, %c0_46] : memref<1x4x64xf32, #tpu.memory_space<vmem>>, vector<1x1x64xf32>
    %103 = vector.shape_cast %102 : vector<1x1x64xf32> to vector<1x64xf32>
    %104 = vector.shape_cast %101 : vector<1x64xf32> to vector<1x1x64xf32>
    tpu.vector_store %arg5[%c0_44, %c1_45, %c0_46], %104 {strides = array<i32>} : memref<1x4x64xf32, #tpu.memory_space<vmem>>, vector<1x1x64xf32>,
    %105 = vector.extract_strided_slice %61 {offsets = [32, 0], sizes = [16, 64], strides = [1, 1]} : vector<64x64xf32> to vector<16x64xf32>
    %106 = arith.mulf %105, %57 : vector<16x64xf32>
    %cst_47 = arith.constant dense<0.000000e+00> : vector<64xf32>
    %107 = vector.multi_reduction <add>, %106, %cst_47 [0] : vector<16x64xf32> to vector<64xf32>
    %108 = vector.shape_cast %107 : vector<64xf32> to vector<1x64xf32>
    %c0_48 = arith.constant 0 : index
    %c2 = arith.constant 2 : index
    %c0_49 = arith.constant 0 : index
    %109 = vector.load %arg4[%c0_48, %c2, %c0_49] : memref<1x4x64xf32, #tpu.memory_space<vmem>>, vector<1x1x64xf32>
    %110 = vector.shape_cast %109 : vector<1x1x64xf32> to vector<1x64xf32>
    %111 = vector.shape_cast %108 : vector<1x64xf32> to vector<1x1x64xf32>
    tpu.vector_store %arg4[%c0_48, %c2, %c0_49], %111 {strides = array<i32>} : memref<1x4x64xf32, #tpu.memory_space<vmem>>, vector<1x1x64xf32>,
    %cst_50 = arith.constant 5.000000e+00 : f32
    %112 = vector.broadcast %cst_50 : f32 to vector<1x64xf32>
    %113 = arith.divf %108, %112 : vector<1x64xf32>
    %cst_51 = arith.constant 0.000000e+00 : f32
    %114 = vector.broadcast %cst_51 : f32 to vector<1x64xf32>
    %115 = arith.select %67, %114, %113 : vector<1x64xi1>, vector<1x64xf32>
    %c0_52 = arith.constant 0 : index
    %c2_53 = arith.constant 2 : index
    %c0_54 = arith.constant 0 : index
    %116 = vector.load %arg5[%c0_52, %c2_53, %c0_54] : memref<1x4x64xf32, #tpu.memory_space<vmem>>, vector<1x1x64xf32>
    %117 = vector.shape_cast %116 : vector<1x1x64xf32> to vector<1x64xf32>
    %118 = vector.shape_cast %115 : vector<1x64xf32> to vector<1x1x64xf32>
    tpu.vector_store %arg5[%c0_52, %c2_53, %c0_54], %118 {strides = array<i32>} : memref<1x4x64xf32, #tpu.memory_space<vmem>>, vector<1x1x64xf32>,
    return
  }
  func.func @transform_0(%arg0: i32, %arg1: i32) -> (i32, i32, i32) {
    %c0_i32 = arith.constant 0 : i32
    %c0_i32_0 = arith.constant 0 : i32
    return %arg0, %c0_i32, %arg1 : i32, i32, i32
  }
  func.func @transform_1(%arg0: i32, %arg1: i32) -> (i32, i32, i32) {
    %c0_i32 = arith.constant 0 : i32
    %c0_i32_0 = arith.constant 0 : i32
    %c0_i32_1 = arith.constant 0 : i32
    return %arg0, %c0_i32, %c0_i32_0 : i32, i32, i32
  }
  func.func @transform_2(%arg0: i32, %arg1: i32) -> (i32, i32, i32) {
    %c0_i32 = arith.constant 0 : i32
    %c0_i32_0 = arith.constant 0 : i32
    return %arg0, %c0_i32, %arg1 : i32, i32, i32
  }
  func.func @transform_3(%arg0: i32, %arg1: i32) -> (i32, i32, i32) {
    %c0_i32 = arith.constant 0 : i32
    %c0_i32_0 = arith.constant 0 : i32
    return %arg0, %c0_i32, %arg1 : i32, i32, i32
  }
}

</mosaic_0001>

<bundles_post_ra>
// kernel: hmar_forward.4
= control target key start
LH: loop header
LB: loop body
LE: loop exit
PB: predicated region body
PF: predicated region fallthrough
CT: control target
= control target key end

     0   :  { %s689_s21 = smov 0   ;;  %s691_s22 = smov 0   ;;  %s742_s0 = inlined_call_operand.vmem [shape: bf16[2,36,64], index: 0, kind: input, shape index: {}]   ;;  %s743_s1 = inlined_call_operand.vmem [shape: bf16[8,36], index: 1, kind: input, shape index: {}]   ;;  %s744_s2 = inlined_call_operand.vmem [shape: f32[8,1], index: 2, kind: input, shape index: {}]   ;;  %s745_s3 = inlined_call_operand.vmem [shape: bf16[2,8], index: 3, kind: input, shape index: {}]   ;;  %s746_s4 = inlined_call_operand.vmem [shape: f32[2,1], index: 4, kind: input, shape index: {}]   ;;  %s747_s5 = inlined_call_operand.vmem [shape: bf16[2,8,64], index: 5, kind: output, shape index: {0}]   ;;  %s748_s6 = inlined_call_operand.vmem [shape: f32[2,2,64], index: 6, kind: output, shape index: {1}]  }
   0x1   :  { %s693_s23 = smov 0  }
   0x2 LB: > { %s29_s24 = sadd.s32 1, %s645_s22  ;;  %p560_p0 = scmp.ge.s32.totalorder %s649_s23, 1  ;;  %s649_s23 = sphi %s693_s23, %s17_s23   ;;  %s645_s22 = sphi %s691_s22, %s750_s22   ;;  %s641_s21 = sphi %s689_s21, %s749_s21  }
   0x3   : > { %p31_p1 = scmp.ge.s32.totalorder %s29_s24, 2  ;;  %p236_p2 = scmp.lt.s32.totalorder %s649_s23, 3 }
   0x5   : > { %s752_s24 = smov (%p31_p1, %s29_s24), 0  ;;  %p237_p3 = pnand %p560_p0, %p236_p2 }
   0x6   : > { %p278_p4 = scmp.lt.s32.totalorder (!%p237_p3), %s641_s21, 1  ;;  %v651_v0 = vmov (!%p237_p3), 0.0   ;;  %vm652_vm0 = vmmov (!%p237_p3), 0   ;;  %v307_v1 = vld [vmem:[%s744_s2] sm:$0xff] (!%p237_p3)  ;;  %v653_v2 = vmov (!%p237_p3), 0   ;;  %vm332_vm1 = vcmask (!%p237_p3), 1041408  }
   0x7   : > { %240 = sbr.rel (%p237_p3) target bundleno = 478 (0x1de), region = 40  ;;  %577 = vmatprep.subr.bf16.mxu0 (!%p237_p3), %v651_v0  ;;  %583 = vmatprep.mubr.msk.bf16.mxu0 (!%p237_p3), %vm652_vm0, %v651_v0  ;;  %v381_v3 = vld [vmem:[%s746_s4] sm:$0x3] (!%p237_p3)  ;;  %vm328_vm2 = vcmask (!%p237_p3), 293888   ;;  %vm378_vm3 = vcmask (!%p237_p3), 519168   ;;  %vm391_vm4 = vcmask (!%p237_p3), 1043456  }
   0x8   : > { %621 = vset.pattern.permute.xlu0 (!%p237_p3), %v653_v2  ;;  %587 = vmatprep.subr.bf16.mxu1 (!%p237_p3), %v651_v0  ;;  %v301_v8 = vld [vmem:[%s743_s1] sm:$0xf] (!%p237_p3)  ;;  %vm387_vm5 = vcmask (!%p237_p3), 64512   ;;  %vm436_vm6 = vcmask (!%p237_p3), 517120  }
   0x9   : > { %310 = vperm.xlu0 (!%p237_p3), %621, %v307_v1   ;;  %589 = vmatprep.mubr.msk.bf16.mxu1 (!%p237_p3), %vm652_vm0, %v651_v0  ;;  %v380_v18 = vld [vmem:[%s745_s3] sm:$0x1] (!%p237_p3) }
   0xd   : > { %384 = vperm.xlu0 (!%p237_p3), %621, %v381_v3  }
   0xe   : > { %s754_s21 = smov (!%p278_p4, %s641_s21), 1 }
   0xf   : > { %s593_s27 = smul.u32 20, %s754_s21  ;;  %s562_s11 = sshll.u32 %s754_s21, 2 }
  0x10   : > { %s292_s14 = scalar_lea.vmem %s747_s5, %s562_s11  ;;  %s563_s17 = sshll.u32 %s754_s21, 1 }
  0x11   : > { %s285_s8 = scalar_lea.vmem %s742_s0, %s593_s27  ;;  %s299_s20 = scalar_lea.vmem %s748_s6, %s563_s17 }
  0x12   : > { %v622_v4 = vld [vmem:[%s285_s8] sm:$0xff]   ;;  %v623_v5 = vld [vmem:[%s285_s8 + $0x8] sm:$0xff]   ;;  %v624_v6 = vld [vmem:[%s285_s8 + $0x10] ss:$0 sps:$4 sm:$0x33]  }
  0x13   : > { %578 = vmatpush3.bf16.msra.mxu0 %v622_v4  ;;  %v334_v7 = vsel %vm332_vm1, %v624_v6, 0 }
  0x14   : > { %579 = vmatprep.subr.bf16.mxu0 %v651_v0 }
  0x17   : > { %580 = vmatpush3.bf16.msra.mxu0 %v623_v5 }
  0x18   : > { %581 = vmatprep.subr.bf16.mxu0 %v651_v0 }
  0x1b   : > { %582 = vmatpush3.bf16.msra.mxu0 %v334_v7 }
  0x1e   : > { %584 = vmatmul.mubr.msk.bf16.vlgmr.msra.gmra.mrb[0].mxu0 %vm328_vm2, %v301_v8 }
  0x88   : > { %v311_v9 = vpop.permute.xlu0 %310 }
  0x8c   : > { %v385_v19 = vpop.permute.xlu0 %384 }
  0xf1   : > { %v370_v10 = vpop.f32.mrb[0].mxu0 }
  0xf2   : > { %v371_v11 = vadd.f32 %v370_v10, %v311_v9  ;;  %v585_v12 = vpop.f32.mrb[1].mxu0 }
  0xf3   : > { %v373_v13 = vpop.f32.mrb[2].mxu0 }
  0xf4   : > { %v376_v14 = vmax.f32 %v371_v11, 0.0  ;;  %v586_v15 = vpop.f32.mrb[3].mxu0 }
  0xf6   : > { %v377_v16 = vpack.c.bf16 %v376_v14, %v376_v14 }
  0xf8   : > { %379 = vst.msk [vmem:[%s292_s14] sm:$0xf] %vm378_vm3, %v377_v16  ;;  %v393_v17 = vsel %vm391_vm4, %v377_v16, 0 }
  0xf9   : > { %588 = vmatpush3.bf16.msra.mxu1 %v393_v17 }
  0xfc   : > { %590 = vmatmul.mubr.msk.bf16.vlgmr.msra.gmra.mrb[0].mxu1 %vm387_vm5, %v380_v18 }
 0x1cf   : > { %v429_v20 = vpop.f32.mrb[0].mxu1 }
 0x1d0   : > { %v430_v21 = vadd.f32 %v429_v20, %v385_v19  ;;  %v591_v22 = vpop.f32.mrb[1].mxu1 }
 0x1d1   : > { %v432_v23 = vpop.f32.mrb[2].mxu1 }
 0x1d2   : > { %625 = vtanh.f32 %v430_v21  ;;  %v592_v24 = vpop.f32.mrb[3].mxu1 }
 0x1dc   : > { %v626_v25 = vpop.eup %625 }
 0x1dd   : > { %437 = vst.msk [vmem:[%s299_s20] sm:$0x3] %vm436_vm6, %v626_v25 }
 0x1de PF: > { %s17_s23 = sadd.s32 1, %s649_s23   ;;  %s749_s21 = smov %s645_s22 }
 0x1df   : > { %p14_p5 = scmp.ge.s32.totalorder %s17_s23, 4   ;;  %s750_s22 = smov %s752_s24 }
 0x1e1   :  { %16 = sbr.rel (!%p14_p5) target bundleno = 2 (0x2), region = 82 }

// kernel: hmar_forward.5
= control target key start
LH: loop header
LB: loop body
LE: loop exit
PB: predicated region body
PF: predicated region fallthrough
CT: control target
= control target key end

     0   :  { %s523_s12 = smov 0   ;;  %s525_s13 = smov 0   ;;  %s569_s0 = inlined_call_operand.vmem [shape: bf16[2,72,16], index: 0, kind: input, shape index: {}]   ;;  %s570_s1 = inlined_call_operand.vmem [shape: bf16[16,72], index: 1, kind: input, shape index: {}]   ;;  %s571_s2 = inlined_call_operand.vmem [shape: f32[16,1], index: 2, kind: input, shape index: {}]   ;;  %s572_s3 = inlined_call_operand.vmem [shape: f32[2,16,1], index: 3, kind: output, shape index: {}]  }
   0x1   :  { %s527_s14 = smov 0  }
   0x2 LB: > { %s25_s15 = sadd.s32 1, %s494_s13  ;;  %p407_p0 = scmp.ge.s32.totalorder %s498_s14, 1  ;;  %s498_s14 = sphi %s527_s14, %s13_s14   ;;  %s494_s13 = sphi %s525_s13, %s574_s13   ;;  %s490_s12 = sphi %s523_s12, %s573_s12  }
   0x3   : > { %p27_p1 = scmp.ge.s32.totalorder %s25_s15, 2  ;;  %p154_p2 = scmp.lt.s32.totalorder %s498_s14, 3 }
   0x5   : > { %s576_s15 = smov (%p27_p1, %s25_s15), 0  ;;  %p155_p3 = pnand %p407_p0, %p154_p2 }
   0x6   : > { %p181_p4 = scmp.lt.s32.totalorder (!%p155_p3), %s490_s12, 1  ;;  %v500_v0 = vmov (!%p155_p3), 0.0   ;;  %vm501_vm0 = vmmov (!%p155_p3), 0   ;;  %v206_v1 = vld [vmem:[%s571_s2] sm:$0xff] (!%p155_p3)  ;;  %v502_v2 = vmov (!%p155_p3), 0   ;;  %v207_v3 = vld [vmem:[%s571_s2 + $0x8] sm:$0xff] (!%p155_p3) }
   0x7   : > { %158 = sbr.rel (%p155_p3) target bundleno = 410 (0x19a), region = 32  ;;  %427 = vmatprep.subr.bf16.mxu0 (!%p155_p3), %v500_v0  ;;  %437 = vmatprep.mubr.msk.bf16.mxu0 (!%p155_p3), %vm501_vm0, %v500_v0  ;;  %vm254_vm1 = vcmask (!%p155_p3), 1043456   ;;  %v475_v10 = vld [vmem:[%s570_s1] sm:$0xff] (!%p155_p3)   ;;  %vm250_vm2 = vcmask (!%p155_p3), 588800   ;;  %vm301_vm3 = vcmask (!%p155_p3), 130048   ;;  %vm312_vm4 = vcmask (!%p155_p3), 7168  }
   0x8   : > { %469 = vset.pattern.permute.xlu0 (!%p155_p3), %v502_v2 }
   0x9   : > { %210 = vperm.xlu0 (!%p155_p3), %469, %v206_v1  }
   0xd   : > { %215 = vperm.xlu0 (!%p155_p3), %469, %v207_v3  }
   0xe   : > { %s578_s12 = smov (!%p181_p4, %s490_s12), 1 }
   0xf   : > { %s441_s18 = smul.u32 36, %s578_s12  ;;  %s420_s26 = sshll.u32 %s578_s12, 4 }
  0x10   : > { %s193_s29 = scalar_lea.vmem %s572_s3, %s420_s26 }
  0x11   : > { %s188_s23 = scalar_lea.vmem %s569_s0, %s441_s18 }
  0x12   : > { %v470_v4 = vld [vmem:[%s188_s23] sm:$0xff]   ;;  %v471_v5 = vld [vmem:[%s188_s23 + $0x8] sm:$0xff]   ;;  %v472_v6 = vld [vmem:[%s188_s23 + $0x10] sm:$0xff]  }
  0x13   : > { %428 = vmatpush3.bf16.msra.mxu0 %v470_v4  ;;  %v473_v7 = vld [vmem:[%s188_s23 + $0x18] sm:$0xff]   ;;  %v474_v8 = vld [vmem:[%s188_s23 + $0x20] ss:$0 sps:$4 sm:$0xff]  }
  0x14   : > { %429 = vmatprep.subr.bf16.mxu0 %v500_v0  ;;  %v256_v9 = vsel %vm254_vm1, %v474_v8, 0 }
  0x17   : > { %430 = vmatpush3.bf16.msra.mxu0 %v471_v5 }
  0x18   : > { %431 = vmatprep.subr.bf16.mxu0 %v500_v0 }
  0x1b   : > { %432 = vmatpush3.bf16.msra.mxu0 %v472_v6 }
  0x1c   : > { %433 = vmatprep.subr.bf16.mxu0 %v500_v0 }
  0x1f   : > { %434 = vmatpush3.bf16.msra.mxu0 %v473_v7 }
  0x20   : > { %435 = vmatprep.subr.bf16.mxu0 %v500_v0 }
  0x23   : > { %436 = vmatpush3.bf16.msra.mxu0 %v256_v9 }
  0x26   : > { %438 = vmatmul.mubr.msk.bf16.vlgmr.msra.gmra.mrb[0].mxu0 %vm250_vm2, %v475_v10 }
  0x88   : > { %v211_v11 = vpop.permute.xlu0 %210 }
  0x8c   : > { %v216_v15 = vpop.permute.xlu0 %215 }
  0xf9   : > { %v292_v12 = vpop.f32.mrb[0].mxu0 }
  0xfa   : > { %v293_v13 = vadd.f32 %v292_v12, %v211_v11  ;;  %v439_v14 = vpop.f32.mrb[1].mxu0 }
  0xfb   : > { %v295_v16 = vpop.f32.mrb[2].mxu0 }
  0xfc   : > { %v299_v17 = vmax.f32 %v293_v13, 0.0  ;;  %v296_v18 = vadd.f32 %v295_v16, %v216_v15  ;;  %v440_v19 = vpop.f32.mrb[3].mxu0 }
  0xfe   : > { %v300_v20 = vmax.f32 %v296_v18, 0.0  ;;  %v302_v21 = vsel %vm301_vm3, %v299_v17, -inf }
  0xff   : > { %303 = vmax.xlane.f32.xlu1 %v302_v21 }
 0x100   : > { %v305_v22 = vsel %vm301_vm3, %v300_v20, -inf }
 0x103   : > { %306 = vmax.xlane.f32.xlu1 %v305_v22 }
 0x18c   : > { %v304_v23 = vpop.xlane.xlu1 %303 }
 0x18d   : > { %313 = vst.msk [vmem:[#allocation2] sm:$0xff] %vm312_vm4, %v304_v23 }
 0x190   : > { %v307_v24 = vpop.xlane.xlu1 %306 }
 0x191   : > { %314 = vst.msk [vmem:[#allocation2 + $0x8] sm:$0xff] %vm312_vm4, %v307_v24 }
 0x194   : > { %v329_v25 = vld [vmem:[#allocation2] sm:$0xff] }
 0x195   : > { %332 = vst.msk [vmem:[%s193_s29] sm:$0xff] %vm312_vm4, %v329_v25 }
 0x198   : > { %v330_v26 = vld [vmem:[#allocation2 + $0x8] sm:$0xff] }
 0x199   : > { %333 = vst.msk [vmem:[%s193_s29 + $0x8] sm:$0xff] %vm312_vm4, %v330_v26 }
 0x19a PF: > { %s13_s14 = sadd.s32 1, %s498_s14   ;;  %s573_s12 = smov %s494_s13 }
 0x19b   : > { %p10_p5 = scmp.ge.s32.totalorder %s13_s14, 4   ;;  %s574_s13 = smov %s576_s15 }
 0x19d   :  { %12 = sbr.rel (!%p10_p5) target bundleno = 2 (0x2), region = 74 }

// kernel: hmar_forward.7
= control target key start
LH: loop header
LB: loop body
LE: loop exit
PB: predicated region body
PF: predicated region fallthrough
CT: control target
= control target key end

     0   :  { %v109_v1 = vmov 0   ;;  %vm40_vm0 = vcmask 130048   ;;  %v20_v4 = vlaneseq  ;;  %s145_s1 = inlined_call_operand.vmem [shape: bf16[16,256], index: 1, kind: input, shape index: {}]   ;;  %s146_s0 = inlined_call_operand.vmem [shape: bf16[2,16], index: 0, kind: input, shape index: {}]   ;;  %s147_s2 = inlined_call_operand.vmem [shape: f32[1,256], index: 2, kind: input, shape index: {}]   ;;  %s148_s3 = inlined_call_operand.vmem [shape: f32[2,256], index: 3, kind: output, shape index: {}]  }
   0x1   :  { %v106_v0 = vld [vmem:[%s145_s1 + $0x4] ss:$8 sps:$4 sm:$0xff]   ;;  %76 = vmatprep.mubr.bf16.mxu0 %v109_v1  ;;  %v108_v2 = vld [vmem:[%s145_s1] ss:$8 sps:$4 sm:$0xff]  }
   0x2   :  { %44 = vmatprep.subr.bf16.mxu0 %v106_v0  ;;  %v15_v3 = vld [vmem:[%s146_s0] sm:$0x1]  ;;  %v21_v5 = vshrl.u32 %v20_v4, 7 }
   0x3   :  { %45 = vmatpush1.bf16.msra.mxu0 %v108_v2  ;;  %v18_v7 = vld [vmem:[%s147_s2] sm:$0x3] }
   0x4   :  { %v22_v6 = vsub.s32 0, %v21_v5  ;;  %v26_v8 = vsub.s32 1, %v21_v5 }
   0x6   :  { %103 = vmatmul.mubr.msk.bf16.vlgmr.msra.gmra.mrb[0].mxu0 %vm40_vm0, %v15_v3  ;;  %v23_v9 = vrot.slane %v18_v7, %v22_v6  ;;  %v27_v10 = vrot.slane %v18_v7, %v26_v8 }
  0xd9   :  { %v78_v11 = vpop.f32.mrb[0].mxu0 }
  0xda   :  { %v79_v12 = vadd.f32 %v78_v11, %v23_v9  ;;  %v80_v13 = vpop.f32.mrb[1].mxu0 }
  0xdb   :  { %v81_v14 = vadd.f32 %v80_v13, %v27_v10  ;;  %v82_v15 = vpop.f32.mrb[2].mxu0 }
  0xdc   :  { %v83_v16 = vpop.f32.mrb[3].mxu0 }
  0xdd   :  { %v87_v17 = vcombine.low %v79_v12, %v81_v14 }
  0xdf   :  { %104 = vst.sshfl [vmem:[%s148_s3] sm:$0x33 pattern:$0x76325410] %v87_v17 }

// kernel: hmar_forward.6
= control target key start
LH: loop header
LB: loop body
LE: loop exit
PB: predicated region body
PF: predicated region fallthrough
CT: control target
= control target key end

     0   :  { %s725_s12 = smov 0   ;;  %s727_s13 = smov 0   ;;  %s795_s0 = inlined_call_operand.vmem [shape: f32[2,2,64], index: 0, kind: input, shape index: {}]   ;;  %s796_s1 = inlined_call_operand.vmem [shape: bf16[2,64,16], index: 1, kind: input, shape index: {}]   ;;  %s797_s2 = inlined_call_operand.vmem [shape: f32[2,4,64], index: 2, kind: output, shape index: {0}]   ;;  %s798_s3 = inlined_call_operand.vmem [shape: f32[2,4,64], index: 3, kind: output, shape index: {1}]  }
   0x1   :  { %s729_s14 = smov 0  }
   0x2 LB: > { %s26_s15 = sadd.s32 1, %s698_s13  ;;  %p611_p0 = scmp.ge.s32.totalorder %s702_s14, 1  ;;  %s702_s14 = sphi %s729_s14, %s14_s14   ;;  %s698_s13 = sphi %s727_s13, %s800_s13   ;;  %s694_s12 = sphi %s725_s12, %s799_s12  }
   0x3   : > { %p28_p1 = scmp.ge.s32.totalorder %s26_s15, 2  ;;  %p170_p2 = scmp.lt.s32.totalorder %s702_s14, 3 }
   0x5   : > { %s802_s15 = smov (%p28_p1, %s26_s15), 0  ;;  %p171_p3 = pnand %p611_p0, %p170_p2 }
   0x6   : > { %p210_p4 = scmp.lt.s32.totalorder (!%p171_p3), %s694_s12, 1  ;;  %vm339_vm0 = vcmask (!%p171_p3), 130048   ;;  %v253_v2 = vlaneseq (!%p171_p3)  ;;  %vm419_vm9 = vcmask (!%p171_p3), 523264   ;;  %vm430_vm10 = vcmask (!%p171_p3), 516096  }
   0x7   : > { %174 = sbr.rel (%p171_p3) target bundleno = 281 (0x119), region = 28 }
   0x8   : > { %v254_v8 = vshrl.u32 (!%p171_p3), %v253_v2, 7 }
   0xa   : > { %v258_v14 = vsub.s32 (!%p171_p3), 0, %v254_v8  ;;  %v255_v18 = vadd.s32 (!%p171_p3), 8, %v254_v8 }
   0xe   : > { %s804_s12 = smov (!%p210_p4, %s694_s12), 1 }
   0xf   : > { %s612_s16 = sshll.u32 %s804_s12, 1  ;;  %s629_s17 = sshll.u32 %s804_s12, 5 }
  0x10   : > { %s216_s20 = scalar_lea.vmem %s795_s0, %s612_s16  ;;  %s753_s23 = scalar_lea.vmem %s796_s1, %s629_s17 }
  0x11   : > { %v238_v0 = vld [vmem:[%s216_s20 + $0x1] sm:$0x1]  ;;  %v677_v4 = vld [vmem:[%s753_s23 + $0x10] sm:$0xff]   ;;  %v237_v6 = vld [vmem:[%s216_s20] sm:$0x1]  ;;  %s615_s24 = sshll.u32 %s804_s12, 2 }
  0x12   : > { %v242_v1 = vadd.f32 1.0, %v238_v0  ;;  %v676_v3 = vld [vmem:[%s753_s23] sm:$0xff]   ;;  %641 = vmatprep.mubr.msk.bf16.mxu1 %vm339_vm0, %v677_v4  ;;  %v239_v9 = vadd.f32 1.0, %v237_v6  ;;  %v678_v42 = vld [vmem:[%s753_s23 + $0x8] sm:$0xff]   ;;  %v679_v43 = vld [vmem:[%s753_s23 + $0x18] sm:$0xff]   ;;  %s228_s27 = scalar_lea.vmem %s797_s2, %s615_s24  ;;  %s235_s30 = scalar_lea.vmem %s798_s3, %s615_s24 }
  0x13   : > { %637 = vmatprep.mubr.msk.bf16.mxu0 %vm339_vm0, %v676_v3 }
  0x14   : > { %v243_v5 = vmul.f32 8.0, %v242_v1  ;;  %v240_v11 = vmul.f32 8.0, %v239_v9 }
  0x16   : > { %v618_v7 = vadd.f32 -0.5, %v243_v5  ;;  %v617_v15 = vadd.f32 -0.5, %v240_v11 }
  0x18   : > { %v246_v10 = vfloor.f32 %v618_v7  ;;  %v245_v19 = vfloor.f32 %v617_v15 }
  0x1a   : > { %v249_v12 = vsub.f32 %v618_v7, %v246_v10  ;;  %v649_v13 = vtrunc.f32 %v246_v10  ;;  %v247_v23 = vsub.f32 %v617_v15, %v245_v19  ;;  %v647_v25 = vtrunc.f32 %v245_v19 }
  0x1c   : > { %v250_v16 = vsub.f32 1.0, %v249_v12  ;;  %v650_v17 = vcvt.f32.s32 %v649_v13  ;;  %v278_v24 = vrot.slane %v249_v12, %v258_v14  ;;  %v248_v27 = vsub.f32 1.0, %v247_v23 }
  0x1d   : > { %v648_v30 = vcvt.f32.s32 %v647_v25  ;;  %v305_v31 = vrot.slane %v247_v23, %v258_v14 }
  0x1e   : > { %v259_v20 = vrot.slane %v650_v17, %v258_v14  ;;  %v265_v21 = vrot.slane %v250_v16, %v258_v14  ;;  %v268_v22 = vadd.s32 1, %v650_v17  ;;  %v292_v32 = vrot.slane %v248_v27, %v258_v14 }
  0x1f   : > { %v286_v35 = vrot.slane %v648_v30, %v258_v14  ;;  %v295_v36 = vadd.s32 1, %v648_v30 }
  0x20   : > { %vm260_vm1 = vcmp.eq.s32.totalorder %v254_v8, %v259_v20  ;;  %vm261_vm2 = vcmp.eq.s32.totalorder %v255_v18, %v259_v20  ;;  %v272_v26 = vrot.slane %v268_v22, %v258_v14 }
  0x21   : > { %v266_v28 = vsel %vm260_vm1, %v265_v21, 0.0  ;;  %v267_v29 = vsel %vm261_vm2, %v265_v21, 0.0  ;;  %vm287_vm5 = vcmp.eq.s32.totalorder %v254_v8, %v286_v35  ;;  %v299_v39 = vrot.slane %v295_v36, %v258_v14 }
  0x22   : > { %vm273_vm3 = vcmp.eq.s32.totalorder %v254_v8, %v272_v26  ;;  %vm274_vm4 = vcmp.eq.s32.totalorder %v255_v18, %v272_v26  ;;  %v293_v41 = vsel %vm287_vm5, %v292_v32, 0.0  ;;  %vm288_vm7 = vcmp.eq.s32.totalorder %v255_v18, %v286_v35 }
  0x23   : > { %v279_v33 = vsel %vm273_vm3, %v278_v24, 0.0  ;;  %v280_v34 = vsel %vm274_vm4, %v278_v24, 0.0  ;;  %vm300_vm6 = vcmp.eq.s32.totalorder %v254_v8, %v299_v39  ;;  %vm301_vm8 = vcmp.eq.s32.totalorder %v255_v18, %v299_v39 }
  0x24   : > { %v281_v37 = vadd.f32 %v279_v33, %v266_v28  ;;  %v282_v38 = vadd.f32 %v280_v34, %v267_v29  ;;  %v306_v44 = vsel %vm300_vm6, %v305_v31, 0.0  ;;  %v294_v46 = vsel %vm288_vm7, %v292_v32, 0.0 }
  0x25   : > { %v308_v45 = vadd.f32 %v306_v44, %v293_v41  ;;  %v307_v47 = vsel %vm301_vm8, %v305_v31, 0.0 }
  0x26   : > { %v318_v40 = vpack.c.bf16 %v282_v38, %v281_v37  ;;  %v309_v48 = vadd.f32 %v307_v47, %v294_v46  ;;  %v704_v38 = vmov 1.0  }
  0x28   : > { %635 = vmatprep.subr.bf16.mxu0 %v318_v40  ;;  %645 = vmatprep.subr.bf16.mxu1 %v318_v40 }
  0x29   : > { %636 = vmatpush3.bf16.msra.mxu0 %v318_v40  ;;  %646 = vmatpush3.bf16.msra.mxu1 %v318_v40 }
  0x2c   : > { %638 = vmatmul.mubr.msk.bf16.vlgmr.msra.gmra.mrb[0].mxu0 %vm339_vm0, %v678_v42  ;;  %642 = vmatmul.mubr.msk.bf16.vlgmr.msra.gmra.mrb[0].mxu1 %vm339_vm0, %v679_v43 }
  0xff   : > { %v639_v49 = vpop.f32.mrb[0].mxu0  ;;  %v643_v50 = vpop.f32.mrb[0].mxu1 }
 0x100   : > { %v450_v51 = vmul.f32 %v639_v49, %v308_v45  ;;  %v417_v52 = vmul.f32 %v643_v50, %v308_v45  ;;  %v386_v53 = vpop.f32.mrb[1].mxu0  ;;  %v402_v54 = vpop.f32.mrb[1].mxu1 }
 0x101   : > { %v434_v55 = vmul.f32 %v386_v53, %v308_v45  ;;  %v465_v56 = vmul.f32 %v402_v54, %v308_v45  ;;  %v640_v57 = vpop.f32.mrb[2].mxu0  ;;  %v644_v58 = vpop.f32.mrb[2].mxu1 }
 0x102   : > { %v451_v59 = vmul.f32 %v640_v57, %v309_v48  ;;  %v418_v60 = vmul.f32 %v644_v58, %v309_v48  ;;  %v389_v61 = vpop.f32.mrb[3].mxu0  ;;  %v405_v62 = vpop.f32.mrb[3].mxu1  ;;  %v452_v63 = vsel %vm419_vm9, %v450_v51, 0.0  ;;  %v420_v0 = vsel %vm419_vm9, %v417_v52, 0.0 }
 0x103   : > { %v435_v1 = vmul.f32 %v389_v61, %v309_v48  ;;  %v466_v2 = vmul.f32 %v405_v62, %v309_v48  ;;  %v436_v3 = vsel %vm419_vm9, %v434_v55, 0.0  ;;  %v467_v4 = vsel %vm419_vm9, %v465_v56, 0.0 }
 0x104   : > { %v453_v5 = vsel %vm419_vm9, %v451_v59, 0.0  ;;  %v421_v6 = vsel %vm419_vm9, %v418_v60, 0.0 }
 0x105   : > { %v454_v7 = vadd.f32 %v453_v5, %v452_v63  ;;  %v422_v8 = vadd.f32 %v421_v6, %v420_v0  ;;  %v437_v9 = vsel %vm419_vm9, %v435_v1, 0.0  ;;  %v468_v10 = vsel %vm419_vm9, %v466_v2, 0.0 }
 0x106   : > { %v438_v11 = vadd.f32 %v437_v9, %v436_v3  ;;  %v469_v12 = vadd.f32 %v468_v10, %v467_v4 }
 0x107   : > { %v455_v13 = vrot.slane %v454_v7, 4  ;;  %v423_v14 = vrot.slane %v422_v8, 4 }
 0x108   : > { %v439_v15 = vrot.slane %v438_v11, 4  ;;  %v470_v16 = vrot.slane %v469_v12, 4 }
 0x109   : > { %v456_v17 = vadd.f32 %v455_v13, %v454_v7  ;;  %v424_v18 = vadd.f32 %v423_v14, %v422_v8 }
 0x10a   : > { %v440_v19 = vadd.f32 %v439_v15, %v438_v11  ;;  %v471_v20 = vadd.f32 %v470_v16, %v469_v12 }
 0x10b   : > { %v457_v21 = vrot.slane %v456_v17, 2  ;;  %v425_v22 = vrot.slane %v424_v18, 2 }
 0x10c   : > { %v441_v23 = vrot.slane %v440_v19, 2  ;;  %v472_v24 = vrot.slane %v471_v20, 2 }
 0x10d   : > { %v458_v25 = vadd.f32 %v457_v21, %v456_v17  ;;  %v426_v26 = vadd.f32 %v425_v22, %v424_v18 }
 0x10e   : > { %v442_v27 = vadd.f32 %v441_v23, %v440_v19  ;;  %v473_v28 = vadd.f32 %v472_v24, %v471_v20 }
 0x10f   : > { %v459_v29 = vrot.slane %v458_v25, 1  ;;  %v427_v30 = vrot.slane %v426_v26, 1 }
 0x110   : > { %v443_v31 = vrot.slane %v442_v27, 1  ;;  %v474_v32 = vrot.slane %v473_v28, 1 }
 0x111   : > { %v460_v33 = vadd.f32 %v459_v29, %v458_v25  ;;  %v428_v34 = vadd.f32 %v427_v30, %v426_v26 }
 0x112   : > { %v444_v35 = vadd.f32 %v443_v31, %v442_v27  ;;  %v475_v36 = vadd.f32 %v474_v32, %v473_v28 }
 0x113   : > { %461 = vst.msk [vmem:[%s228_s27 + $0x1] sm:$0x1] %vm430_vm10, %v460_v33  ;;  %v462_v37 = vmul.f32 0.2, %v460_v33  ;;  %vm429_vm11 = vcmp.eq.f32.partialorder %v428_v34, 0.0 }
 0x114   : > { %431 = vst.msk [vmem:[%s228_s27 + $0x3] sm:$0x1] %vm430_vm10, %v428_v34  ;;  %v432_v39 = vsel %vm429_vm11, -1.0, %v704_v38  ;;  %445 = vst.msk [vmem:[%s228_s27] sm:$0x1] %vm430_vm10, %v444_v35 }
 0x115   : > { %v447_v40 = vmul.f32 0.2, %v444_v35  ;;  %476 = vst.msk [vmem:[%s228_s27 + $0x2] sm:$0x1] %vm430_vm10, %v475_v36  ;;  %v477_v41 = vmul.f32 0.2, %v475_v36 }
 0x116   : > { %433 = vst.msk [vmem:[%s235_s30 + $0x3] sm:$0x1] %vm430_vm10, %v432_v39  ;;  %v463_v42 = vsel %vm429_vm11, 0.0, %v462_v37 }
 0x117   : > { %464 = vst.msk [vmem:[%s235_s30 + $0x1] sm:$0x1] %vm430_vm10, %v463_v42  ;;  %v448_v43 = vsel %vm429_vm11, 0.0, %v447_v40  ;;  %v478_v44 = vsel %vm429_vm11, 0.0, %v477_v41 }
 0x118   : > { %449 = vst.msk [vmem:[%s235_s30] sm:$0x1] %vm430_vm10, %v448_v43  ;;  %479 = vst.msk [vmem:[%s235_s30 + $0x2] sm:$0x1] %vm430_vm10, %v478_v44 }
 0x119 PF: > { %s14_s14 = sadd.s32 1, %s702_s14   ;;  %s799_s12 = smov %s698_s13 }
 0x11a   : > { %p11_p5 = scmp.ge.s32.totalorder %s14_s14, 4   ;;  %s800_s13 = smov %s802_s15 }
 0x11c   :  { %13 = sbr.rel (!%p11_p5) target bundleno = 2 (0x2), region = 73 }

</bundles_post_ra>
